<compile_context>
chip_gen: v5e
topology: v5e:2x2
jax: 0.10.0
libtpu: 0.0.40
codegen_flags: <defaults>
</compile_context>

<pallas_src>
import jax
import jax.numpy as jnp
from jax.experimental import pallas as pl
from jax.experimental.pallas import tpu as pltpu


# ----------------------------- constants ------------------------------------
HL_NODES = 32          # hidden-layer width (constants.HL_NODES)
STATE_SIZE = 16        # state_size
ACTION_SIZE = 8        # action_size
FEAT = 128             # lane-padded feature width inside the kernel
N_LAYERS = 5


def _round_up(n, m):
    return ((n + m - 1) // m) * m


# ------------------------------ kernel --------------------------------------
def qnetwork_kernel(x_ref, w_ref, b_ref, out_ref):
    """One batch tile: 5 matmuls + 4 ReLUs, all operands VMEM-resident.

    x_ref : [tm, STATE_SIZE]   f32 compact activations
    w_ref : [5, 128, 128]      packed, zero-padded weights (f32 or bf16)
    b_ref : [5, 1, 128]        packed, zero-padded biases (f32)
    out   : [tm, ACTION_SIZE]  f32 compact output
    """
    cdt = w_ref.dtype                      # MXU operand dtype (f32 or bf16)

    # Layer 1: compact input against a static sublane slice of the slab
    # (STATE_SIZE=16 is a multiple of the f32 sublane tile of 8 -> free).
    h = jnp.dot(x_ref[...].astype(cdt), w_ref[0, :STATE_SIZE, :],
                preferred_element_type=jnp.float32) + b_ref[0]
    h = jnp.maximum(h, 0.0)

    # Layers 2..5 (padded lanes stay exactly zero because padded weight
    # rows/cols and biases are zero).
    for i in range(1, N_LAYERS):           # static unroll
        z = jnp.dot(h.astype(cdt), w_ref[i],
                    preferred_element_type=jnp.float32) + b_ref[i]
        h = jnp.maximum(z, 0.0) if i < N_LAYERS - 1 else z

    # Compact writeback: only the meaningful action lanes.
    out_ref[...] = h[:, :ACTION_SIZE]


# ------------------------------ wrapper --------------------------------------
def qnetwork_forward(x, w_packed, b_packed, action_size):
    """x: [B, STATE_SIZE] f32. w_packed: [5,128,128], b_packed: [5,1,128]."""
    B, state_size = x.shape
    assert state_size == STATE_SIZE

    # Tile selection: single tile for small batches (launch-latency bound);
    # for large batches use big tiles (overhead amortization) while keeping
    # >= 2 grid steps so both v7x TensorCores are used.
    if B <= 256:
        tm = _round_up(max(B, 1), 8)
        B_pad = tm
    else:
        tm = min(2048, max(128, _round_up((B + 1) // 2, 128)))
        B_pad = _round_up(B, tm)

    # Pad only batch rows (compact feature dim). Padded rows are sliced off.
    if B_pad != B:
        x_pad = jnp.zeros((B_pad, STATE_SIZE), jnp.float32).at[:B].set(x)
    else:
        x_pad = x.astype(jnp.float32)

    grid = (B_pad // tm,)
    out = pl.pallas_call(
        qnetwork_kernel,
        out_shape=jax.ShapeDtypeStruct((B_pad, ACTION_SIZE), jnp.float32),
        grid=grid,
        in_specs=[
            pl.BlockSpec((tm, STATE_SIZE), lambda i: (i, 0)),        # x tile
            pl.BlockSpec(w_packed.shape, lambda i: (0, 0, 0)),       # resident
            pl.BlockSpec(b_packed.shape, lambda i: (0, 0, 0)),       # resident
        ],
        out_specs=pl.BlockSpec((tm, ACTION_SIZE), lambda i: (i, 0)),
        compiler_params=pltpu.CompilerParams(
            dimension_semantics=("parallel",)),
    )(x_pad, w_packed, b_packed)

    if B_pad != B:
        out = out[:B]
    return out


# -------------------------- parameter init / packing -------------------------
def init_linear(key, fan_in, fan_out):
    """PyTorch nn.Linear default init (uniform +-1/sqrt(fan_in)).
    Weight stored as [in, out] so the kernel computes x @ W + b."""
    kw, kb = jax.random.split(key)
    bound = 1.0 / jnp.sqrt(jnp.float32(fan_in))
    w = jax.random.uniform(kw, (fan_in, fan_out), jnp.float32, -bound, bound)
    b = jax.random.uniform(kb, (1, fan_out), jnp.float32, -bound, bound)
    return w, b


def make_params(key, state_size, action_size, hidden):
    keys = jax.random.split(key, N_LAYERS)
    dims = [(state_size, hidden), (hidden, hidden), (hidden, hidden),
            (hidden, hidden), (hidden, action_size)]
    return [init_linear(k, fi, fo) for k, (fi, fo) in zip(keys, dims)]


def pack_params(params, feat=FEAT, w_dtype=jnp.float32):
    """Pack 5 (W, b) pairs into one zero-padded weight slab and one bias slab.
    Pack once, keep resident on device across calls. On v6e/v7x prefer
    w_dtype=jnp.bfloat16 (native MXU operand, half the slab bytes); keep f32
    on v5e unless the accuracy budget allows bf16."""
    w_packed = jnp.zeros((N_LAYERS, feat, feat), w_dtype)
    b_packed = jnp.zeros((N_LAYERS, 1, feat), jnp.float32)
    for i, (w, b) in enumerate(params):
        fi, fo = w.shape
        assert fi <= feat and fo <= feat
        w_packed = w_packed.at[i, :fi, :fo].set(w.astype(w_dtype))
        b_packed = b_packed.at[i, 0, :fo].set(b.reshape(-1))
    return w_packed, b_packed


# pure-JAX reference
def qnetwork_ref(x, params):
    h = x
    for i, (w, b) in enumerate(params):
        h = h @ w + b
        if i < len(params) - 1:
            h = jnp.maximum(h, 0.0)
    return h


# -------------------------------- main ---------------------------------------
if __name__ == "__main__":
    key = jax.random.PRNGKey(0)
    k_x, k_p, k_x2 = jax.random.split(key, 3)

    params = make_params(k_p, STATE_SIZE, ACTION_SIZE, HL_NODES)
    w_f32, b_f32 = pack_params(params)                       # f32 operand slab

    # Small batch (single tile, grid=(1,)).
    x_small = jax.random.normal(k_x, (8, STATE_SIZE), jnp.float32)
    y = jax.block_until_ready(qnetwork_forward(x_small, w_f32, b_f32, ACTION_SIZE))
    y_ref = qnetwork_ref(x_small, params)
    assert y.shape == (8, ACTION_SIZE)
    assert jnp.allclose(y, y_ref, atol=1e-4, rtol=1e-4), "f32 small-batch mismatch"

    # Larger ragged batch: tm=256, batch padded to 512, grid=(2,) so both
    # TensorCores get a tile on v7x ("parallel" grid axis).
    x_big = jax.random.normal(k_x2, (300, STATE_SIZE), jnp.float32)
    y2 = jax.block_until_ready(qnetwork_forward(x_big, w_f32, b_f32, ACTION_SIZE))
    y2_ref = qnetwork_ref(x_big, params)
    assert y2.shape == (300, ACTION_SIZE)
    assert jnp.allclose(y2, y2_ref, atol=1e-4, rtol=1e-4), "f32 big-batch mismatch"

    # bf16 MXU-operand fast path (recommended default on v6e/v7x); f32
    # accumulation in-kernel. Looser tolerance reflects the bf16 activation
    # cast per layer — a deliberate accuracy/speed tradeoff.
    w_bf16, b_bf16 = pack_params(params, w_dtype=jnp.bfloat16)
    y3 = jax.block_until_ready(qnetwork_forward(x_big, w_bf16, b_bf16, ACTION_SIZE))
    assert jnp.allclose(y3, y2_ref, atol=1e-1, rtol=1e-1), "bf16 variant mismatch"

    print("KERNEL_OK")
</pallas_src>

<mosaic_0001>
module attributes {stable_mosaic.version = 11 : i64} {
  func.func @qnetwork_kernel(%arg0: i32, %arg1: memref<8x16xf32, #tpu.memory_space<vmem>>, %arg2: memref<5x128x128xf32, #tpu.memory_space<vmem>>, %arg3: memref<5x1x128xf32, #tpu.memory_space<vmem>>, %arg4: memref<8x8xf32, #tpu.memory_space<vmem>>) attributes {dimension_semantics = [#tpu.dimension_semantics<parallel>], iteration_bounds = array<i64: 1>, scalar_prefetch = 0 : i64, scratch_operands = 0 : i64, tpu.core_type = #tpu.core_type<tc>, window_params = [{transform_indices = @transform_0, window_bounds = array<i64: 8, 16>}, {pipeline_mode = #tpu.pipeline_mode<synchronous>, transform_indices = @transform_1, window_bounds = array<i64: 5, 128, 128>}, {pipeline_mode = #tpu.pipeline_mode<synchronous>, transform_indices = @transform_2, window_bounds = array<i64: 5, 1, 128>}, {transform_indices = @transform_3, window_bounds = array<i64: 8, 8>}]} {
    %c0 = arith.constant 0 : index
    %c0_0 = arith.constant 0 : index
    %0 = vector.load %arg1[%c0, %c0_0] : memref<8x16xf32, #tpu.memory_space<vmem>>, vector<8x16xf32>
    %c0_1 = arith.constant 0 : index
    %c0_2 = arith.constant 0 : index
    %c0_3 = arith.constant 0 : index
    %1 = vector.load %arg2[%c0_1, %c0_2, %c0_3] : memref<5x128x128xf32, #tpu.memory_space<vmem>>, vector<1x16x128xf32>
    %2 = vector.shape_cast %1 : vector<1x16x128xf32> to vector<16x128xf32>
    %cst = arith.constant dense<0.000000e+00> : vector<8x128xf32>
    %3 = tpu.matmul %0, %2, %cst {dimension_numbers = #tpu.dot_dimension_numbers<[1], [0], [0], [1], [0, 0, 1, 1], [], []>} : vector<8x16xf32>, vector<16x128xf32>, vector<8x128xf32> -> vector<8x128xf32>
    %c0_4 = arith.constant 0 : index
    %c0_5 = arith.constant 0 : index
    %c0_6 = arith.constant 0 : index
    %4 = vector.load %arg3[%c0_4, %c0_5, %c0_6] : memref<5x1x128xf32, #tpu.memory_space<vmem>>, vector<1x1x128xf32>
    %5 = vector.shape_cast %4 : vector<1x1x128xf32> to vector<1x128xf32>
    %6 = vector.broadcast %5 : vector<1x128xf32> to vector<8x128xf32>
    %7 = arith.addf %3, %6 : vector<8x128xf32>
    %cst_7 = arith.constant 0.000000e+00 : f32
    %8 = vector.broadcast %cst_7 : f32 to vector<8x128xf32>
    %9 = arith.maximumf %7, %8 : vector<8x128xf32>
    %c1 = arith.constant 1 : index
    %c0_8 = arith.constant 0 : index
    %c0_9 = arith.constant 0 : index
    %10 = vector.load %arg2[%c1, %c0_8, %c0_9] : memref<5x128x128xf32, #tpu.memory_space<vmem>>, vector<1x128x128xf32>
    %11 = vector.shape_cast %10 : vector<1x128x128xf32> to vector<128x128xf32>
    %cst_10 = arith.constant dense<0.000000e+00> : vector<8x128xf32>
    %12 = tpu.matmul %9, %11, %cst_10 {dimension_numbers = #tpu.dot_dimension_numbers<[1], [0], [0], [1], [0, 0, 1, 1], [], []>} : vector<8x128xf32>, vector<128x128xf32>, vector<8x128xf32> -> vector<8x128xf32>
    %c1_11 = arith.constant 1 : index
    %c0_12 = arith.constant 0 : index
    %c0_13 = arith.constant 0 : index
    %13 = vector.load %arg3[%c1_11, %c0_12, %c0_13] : memref<5x1x128xf32, #tpu.memory_space<vmem>>, vector<1x1x128xf32>
    %14 = vector.shape_cast %13 : vector<1x1x128xf32> to vector<1x128xf32>
    %15 = vector.broadcast %14 : vector<1x128xf32> to vector<8x128xf32>
    %16 = arith.addf %12, %15 : vector<8x128xf32>
    %cst_14 = arith.constant 0.000000e+00 : f32
    %17 = vector.broadcast %cst_14 : f32 to vector<8x128xf32>
    %18 = arith.maximumf %16, %17 : vector<8x128xf32>
    %c2 = arith.constant 2 : index
    %c0_15 = arith.constant 0 : index
    %c0_16 = arith.constant 0 : index
    %19 = vector.load %arg2[%c2, %c0_15, %c0_16] : memref<5x128x128xf32, #tpu.memory_space<vmem>>, vector<1x128x128xf32>
    %20 = vector.shape_cast %19 : vector<1x128x128xf32> to vector<128x128xf32>
    %cst_17 = arith.constant dense<0.000000e+00> : vector<8x128xf32>
    %21 = tpu.matmul %18, %20, %cst_17 {dimension_numbers = #tpu.dot_dimension_numbers<[1], [0], [0], [1], [0, 0, 1, 1], [], []>} : vector<8x128xf32>, vector<128x128xf32>, vector<8x128xf32> -> vector<8x128xf32>
    %c2_18 = arith.constant 2 : index
    %c0_19 = arith.constant 0 : index
    %c0_20 = arith.constant 0 : index
    %22 = vector.load %arg3[%c2_18, %c0_19, %c0_20] : memref<5x1x128xf32, #tpu.memory_space<vmem>>, vector<1x1x128xf32>
    %23 = vector.shape_cast %22 : vector<1x1x128xf32> to vector<1x128xf32>
    %24 = vector.broadcast %23 : vector<1x128xf32> to vector<8x128xf32>
    %25 = arith.addf %21, %24 : vector<8x128xf32>
    %cst_21 = arith.constant 0.000000e+00 : f32
    %26 = vector.broadcast %cst_21 : f32 to vector<8x128xf32>
    %27 = arith.maximumf %25, %26 : vector<8x128xf32>
    %c3 = arith.constant 3 : index
    %c0_22 = arith.constant 0 : index
    %c0_23 = arith.constant 0 : index
    %28 = vector.load %arg2[%c3, %c0_22, %c0_23] : memref<5x128x128xf32, #tpu.memory_space<vmem>>, vector<1x128x128xf32>
    %29 = vector.shape_cast %28 : vector<1x128x128xf32> to vector<128x128xf32>
    %cst_24 = arith.constant dense<0.000000e+00> : vector<8x128xf32>
    %30 = tpu.matmul %27, %29, %cst_24 {dimension_numbers = #tpu.dot_dimension_numbers<[1], [0], [0], [1], [0, 0, 1, 1], [], []>} : vector<8x128xf32>, vector<128x128xf32>, vector<8x128xf32> -> vector<8x128xf32>
    %c3_25 = arith.constant 3 : index
    %c0_26 = arith.constant 0 : index
    %c0_27 = arith.constant 0 : index
    %31 = vector.load %arg3[%c3_25, %c0_26, %c0_27] : memref<5x1x128xf32, #tpu.memory_space<vmem>>, vector<1x1x128xf32>
    %32 = vector.shape_cast %31 : vector<1x1x128xf32> to vector<1x128xf32>
    %33 = vector.broadcast %32 : vector<1x128xf32> to vector<8x128xf32>
    %34 = arith.addf %30, %33 : vector<8x128xf32>
    %cst_28 = arith.constant 0.000000e+00 : f32
    %35 = vector.broadcast %cst_28 : f32 to vector<8x128xf32>
    %36 = arith.maximumf %34, %35 : vector<8x128xf32>
    %c4 = arith.constant 4 : index
    %c0_29 = arith.constant 0 : index
    %c0_30 = arith.constant 0 : index
    %37 = vector.load %arg2[%c4, %c0_29, %c0_30] : memref<5x128x128xf32, #tpu.memory_space<vmem>>, vector<1x128x128xf32>
    %38 = vector.shape_cast %37 : vector<1x128x128xf32> to vector<128x128xf32>
    %cst_31 = arith.constant dense<0.000000e+00> : vector<8x128xf32>
    %39 = tpu.matmul %36, %38, %cst_31 {dimension_numbers = #tpu.dot_dimension_numbers<[1], [0], [0], [1], [0, 0, 1, 1], [], []>} : vector<8x128xf32>, vector<128x128xf32>, vector<8x128xf32> -> vector<8x128xf32>
    %c4_32 = arith.constant 4 : index
    %c0_33 = arith.constant 0 : index
    %c0_34 = arith.constant 0 : index
    %40 = vector.load %arg3[%c4_32, %c0_33, %c0_34] : memref<5x1x128xf32, #tpu.memory_space<vmem>>, vector<1x1x128xf32>
    %41 = vector.shape_cast %40 : vector<1x1x128xf32> to vector<1x128xf32>
    %42 = vector.broadcast %41 : vector<1x128xf32> to vector<8x128xf32>
    %43 = arith.addf %39, %42 : vector<8x128xf32>
    %44 = vector.extract_strided_slice %43 {offsets = [0, 0], sizes = [8, 8], strides = [1, 1]} : vector<8x128xf32> to vector<8x8xf32>
    %c0_35 = arith.constant 0 : index
    %c0_36 = arith.constant 0 : index
    %45 = vector.load %arg4[%c0_35, %c0_36] : memref<8x8xf32, #tpu.memory_space<vmem>>, vector<8x8xf32>
    tpu.vector_store %arg4[%c0_35, %c0_36], %44 {strides = array<i32>} : memref<8x8xf32, #tpu.memory_space<vmem>>, vector<8x8xf32>,
    return
  }
  func.func @transform_0(%arg0: i32) -> (i32, i32) {
    %c0_i32 = arith.constant 0 : i32
    %c0_i32_0 = arith.constant 0 : i32
    return %arg0, %c0_i32 : i32, i32
  }
  func.func @transform_1(%arg0: i32) -> (i32, i32, i32) {
    %c0_i32 = arith.constant 0 : i32
    %c0_i32_0 = arith.constant 0 : i32
    %c0_i32_1 = arith.constant 0 : i32
    %c0_i32_2 = arith.constant 0 : i32
    return %c0_i32, %c0_i32_0, %c0_i32_1 : i32, i32, i32
  }
  func.func @transform_2(%arg0: i32) -> (i32, i32, i32) {
    %c0_i32 = arith.constant 0 : i32
    %c0_i32_0 = arith.constant 0 : i32
    %c0_i32_1 = arith.constant 0 : i32
    %c0_i32_2 = arith.constant 0 : i32
    return %c0_i32, %c0_i32_0, %c0_i32_1 : i32, i32, i32
  }
  func.func @transform_3(%arg0: i32) -> (i32, i32) {
    %c0_i32 = arith.constant 0 : i32
    %c0_i32_0 = arith.constant 0 : i32
    return %arg0, %c0_i32 : i32, i32
  }
}

</mosaic_0001>

<bundles_post_ra>
// kernel: tpu_custom_call.1
= control target key start
LH: loop header
LB: loop body
LE: loop exit
PB: predicated region body
PF: predicated region fallthrough
CT: control target
= control target key end

     0   :  { %8 = vsyncpa [#allocation3], 0  ;;  %s439_s0 = inlined_call_operand.hbm [shape: f32[8,16], index: 0, kind: input, shape index: {}]   ;;  %s440_s1 = inlined_call_operand.hbm [shape: f32[5,128,128], index: 1, kind: input, shape index: {}]   ;;  %s441_s2 = inlined_call_operand.hbm [shape: f32[5,1,128], index: 2, kind: input, shape index: {}]   ;;  %s442_s3 = inlined_call_operand.hbm [shape: f32[8,8], index: 3, kind: output, shape index: {}]  }
   0x1   :  { %9 = vsyncpa [#allocation6], 0  ;;  %s26_s14 = sshll.u32 %s440_s1, 4  ;;  %s27_s14 = int_to_ptr.hbm [resolvable:$true] %s26_s14 }
   0x2   :  { %10 = vsyncpa [#allocation4], 0  ;;  %s399_s15 = smov [#allocation5]   ;;  %s16_s19 = sshll.u32 %s439_s0, 4  ;;  %s17_s19 = int_to_ptr.hbm [resolvable:$true] %s16_s19 }
   0x3   :  { %s28_s16 = sshll.u32 %s399_s15, 4  ;;  %s400_s20 = smov 128   ;;  %s29_s16 = int_to_ptr.vmem [resolvable:$true] %s28_s16 }
   0x4   :  { %s401_s21 = smov 8   ;;  %s402_s22 = smov [#allocation2]  }
   0x5   :  { %34 = dma.hbm_to_vmem [thread:$0]  %s27_s14, 10240, %s29_s16, [#allocation6], %s400_s20, %s400_s20, %s401_s21  }
   0x6   :  { %s18_s23 = sshll.u32 %s402_s22, 4  ;;  %s39_s26 = sshll.u32 %s441_s2, 4  ;;  %s19_s23 = int_to_ptr.vmem [resolvable:$true] %s18_s23  ;;  %s40_s26 = int_to_ptr.hbm [resolvable:$true] %s39_s26 }
   0x7   :  { %21 = dma.hbm_to_vmem [thread:$0]  %s17_s19, 128, %s19_s23, [#allocation3]  }
   0x8   :  { %s403_s1 = smov [#allocation7]   ;;  %s404_s28 = smov 16  }
   0x9   :  { %s41_s27 = sshll.u32 %s403_s1, 4  ;;  %s405_s29 = smov 1   ;;  %s42_s27 = int_to_ptr.vmem [resolvable:$true] %s41_s27 }
   0xa   :  { %47 = dma.hbm_to_vmem [thread:$0]  %s40_s26, 80, %s42_s27, [#allocation6], %s404_s28, %s404_s28, %s405_s29  }
   0xb   :  { %393 = dma.done.wait [#allocation3], 128  }
   0xc   :  { %394 = vsyncadd [#allocation3], 4294967168 }
   0xd   :  { %395 = dma.done.wait [#allocation6], 10320  }
   0xe   :  { %396 = vsyncadd [#allocation6], 4294956976  ;;  %v62_v0 = vld [vmem:[#allocation5 + $0x8] sm:$0xff]  ;;  %v61_v1 = vld [vmem:[#allocation5] sm:$0xff]  ;;  %vm67_vm0 = vcmask 130048   ;;  %s406_s0 = smov [#allocation8]  }
   0xf   :  { %85 = vmatpush.msra.mxu0 %v62_v0  ;;  %v60_v2 = vld [vmem:[#allocation2] sm:$0xff]  ;;  %v107_v4 = vld [vmem:[#allocation5 + $0xf0] sm:$0xff]  ;;  %v106_v5 = vld [vmem:[#allocation5 + $0xe8] sm:$0xff]  ;;  %s270_s2 = sshll.u32 %s406_s0, 4  ;;  %s272_s5 = sshll.u32 %s442_s3, 4  ;;  %vm263_vm1 = vcmask 64512   ;;  %s271_s2 = int_to_ptr.vmem [resolvable:$true] %s270_s2  ;;  %s273_s5 = int_to_ptr.hbm [resolvable:$true] %s272_s5 }
  0x10   :  { %v108_v3 = vld [vmem:[#allocation5 + $0xf8] sm:$0xff]  ;;  %v105_v6 = vld [vmem:[#allocation5 + $0xe0] sm:$0xff]  ;;  %v103_v8 = vld [vmem:[#allocation5 + $0xd0] sm:$0xff] }
  0x11   :  { %114 = vmatpush.msra.mxu1 %v108_v3  ;;  %86 = vmatpush.msra.mxu0 %v61_v1  ;;  %v104_v7 = vld [vmem:[#allocation5 + $0xd8] sm:$0xff]  ;;  %v102_v9 = vld [vmem:[#allocation5 + $0xc8] sm:$0xff]  ;;  %v101_v10 = vld [vmem:[#allocation5 + $0xc0] sm:$0xff] }
  0x12   :  { %283 = vmatmul.msk.f32.vlgmr.msra.gmra.mxu0 %vm67_vm0, %v60_v2  ;;  %v100_v11 = vld [vmem:[#allocation5 + $0xb8] sm:$0xff]  ;;  %v99_v12 = vld [vmem:[#allocation5 + $0xb0] sm:$0xff]  ;;  %v98_v13 = vld [vmem:[#allocation5 + $0xa8] sm:$0xff] }
  0x13   :  { %115 = vmatpush.msra.mxu1 %v107_v4  ;;  %v97_v14 = vld [vmem:[#allocation5 + $0xa0] sm:$0xff]  ;;  %v96_v15 = vld [vmem:[#allocation5 + $0x98] sm:$0xff]  ;;  %v95_v16 = vld [vmem:[#allocation5 + $0x90] sm:$0xff] }
  0x14   :  { %v94_v17 = vld [vmem:[#allocation5 + $0x88] sm:$0xff]  ;;  %v93_v18 = vld [vmem:[#allocation5 + $0x80] sm:$0xff]  ;;  %v151_v19 = vld [vmem:[#allocation5 + $0x178] sm:$0xff] }
  0x15   :  { %116 = vmatpush.msra.mxu1 %v106_v5  ;;  %v150_v20 = vld [vmem:[#allocation5 + $0x170] sm:$0xff]  ;;  %157 = vmatpush.msra.mxu2 %v151_v19  ;;  %v149_v21 = vld [vmem:[#allocation5 + $0x168] sm:$0xff]  ;;  %v148_v22 = vld [vmem:[#allocation5 + $0x160] sm:$0xff] }
  0x16   :  { %v147_v23 = vld [vmem:[#allocation5 + $0x158] sm:$0xff]  ;;  %v146_v24 = vld [vmem:[#allocation5 + $0x150] sm:$0xff]  ;;  %v145_v25 = vld [vmem:[#allocation5 + $0x148] sm:$0xff] }
  0x17   :  { %117 = vmatpush.msra.mxu1 %v105_v6  ;;  %158 = vmatpush.msra.mxu2 %v150_v20  ;;  %v144_v26 = vld [vmem:[#allocation5 + $0x140] sm:$0xff]  ;;  %v143_v27 = vld [vmem:[#allocation5 + $0x138] sm:$0xff]  ;;  %v142_v28 = vld [vmem:[#allocation5 + $0x130] sm:$0xff] }
  0x18   :  { %v141_v29 = vld [vmem:[#allocation5 + $0x128] sm:$0xff]  ;;  %v140_v30 = vld [vmem:[#allocation5 + $0x120] sm:$0xff]  ;;  %v139_v31 = vld [vmem:[#allocation5 + $0x118] sm:$0xff] }
  0x19   :  { %118 = vmatpush.msra.mxu1 %v104_v7  ;;  %159 = vmatpush.msra.mxu2 %v149_v21  ;;  %v292_v32 = vld [vmem:[#allocation7] ss:$0 sm:$0xff]  ;;  %v138_v36 = vld [vmem:[#allocation5 + $0x110] sm:$0xff]  ;;  %v137_v37 = vld [vmem:[#allocation5 + $0x108] sm:$0xff] }
  0x1a   :  { %v136_v38 = vld [vmem:[#allocation5 + $0x100] sm:$0xff]  ;;  %v194_v39 = vld [vmem:[#allocation5 + $0x1f8] sm:$0xff]  ;;  %v193_v40 = vld [vmem:[#allocation5 + $0x1f0] sm:$0xff] }
  0x1b   :  { %119 = vmatpush.msra.mxu1 %v103_v8  ;;  %160 = vmatpush.msra.mxu2 %v148_v22  ;;  %v192_v41 = vld [vmem:[#allocation5 + $0x1e8] sm:$0xff]  ;;  %v191_v42 = vld [vmem:[#allocation5 + $0x1e0] sm:$0xff]  ;;  %v190_v43 = vld [vmem:[#allocation5 + $0x1d8] sm:$0xff] }
  0x1c   :  { %200 = vmatpush.msra.mxu3 %v194_v39  ;;  %v189_v44 = vld [vmem:[#allocation5 + $0x1d0] sm:$0xff]  ;;  %v188_v45 = vld [vmem:[#allocation5 + $0x1c8] sm:$0xff]  ;;  %v187_v46 = vld [vmem:[#allocation5 + $0x1c0] sm:$0xff] }
  0x1d   :  { %120 = vmatpush.msra.mxu1 %v102_v9  ;;  %161 = vmatpush.msra.mxu2 %v147_v23  ;;  %v186_v47 = vld [vmem:[#allocation5 + $0x1b8] sm:$0xff]  ;;  %v185_v48 = vld [vmem:[#allocation5 + $0x1b0] sm:$0xff]  ;;  %v184_v49 = vld [vmem:[#allocation5 + $0x1a8] sm:$0xff] }
  0x1e   :  { %201 = vmatpush.msra.mxu3 %v193_v40  ;;  %v183_v50 = vld [vmem:[#allocation5 + $0x1a0] sm:$0xff]  ;;  %v182_v51 = vld [vmem:[#allocation5 + $0x198] sm:$0xff]  ;;  %v181_v56 = vld [vmem:[#allocation5 + $0x190] sm:$0xff] }
  0x1f   :  { %121 = vmatpush.msra.mxu1 %v101_v10  ;;  %162 = vmatpush.msra.mxu2 %v146_v24  ;;  %v293_v52 = vld [vmem:[#allocation7 + $0x1] ss:$0 sm:$0xff]  ;;  %v180_v57 = vld [vmem:[#allocation5 + $0x188] sm:$0xff]  ;;  %v237_v59 = vld [vmem:[#allocation5 + $0x278] sm:$0xff] }
  0x20   :  { %202 = vmatpush.msra.mxu3 %v192_v41  ;;  %v179_v58 = vld [vmem:[#allocation5 + $0x180] sm:$0xff]  ;;  %v236_v60 = vld [vmem:[#allocation5 + $0x270] sm:$0xff]  ;;  %243 = vmatpush.msrb.mxu0 %v237_v59  ;;  %v235_v61 = vld [vmem:[#allocation5 + $0x268] sm:$0xff] }
  0x21   :  { %122 = vmatpush.msra.mxu1 %v100_v11  ;;  %163 = vmatpush.msra.mxu2 %v145_v25  ;;  %v234_v62 = vld [vmem:[#allocation5 + $0x260] sm:$0xff]  ;;  %v233_v63 = vld [vmem:[#allocation5 + $0x258] sm:$0xff]  ;;  %v232_v0 = vld [vmem:[#allocation5 + $0x250] sm:$0xff] }
  0x22   :  { %203 = vmatpush.msra.mxu3 %v191_v42  ;;  %244 = vmatpush.msrb.mxu0 %v236_v60  ;;  %v231_v1 = vld [vmem:[#allocation5 + $0x248] sm:$0xff]  ;;  %v230_v2 = vld [vmem:[#allocation5 + $0x240] sm:$0xff]  ;;  %v229_v3 = vld [vmem:[#allocation5 + $0x238] sm:$0xff] }
  0x23   :  { %123 = vmatpush.msra.mxu1 %v99_v12  ;;  %164 = vmatpush.msra.mxu2 %v144_v26  ;;  %v228_v4 = vld [vmem:[#allocation5 + $0x230] sm:$0xff]  ;;  %v227_v5 = vld [vmem:[#allocation5 + $0x228] sm:$0xff]  ;;  %v226_v6 = vld [vmem:[#allocation5 + $0x220] sm:$0xff] }
  0x24   :  { %204 = vmatpush.msra.mxu3 %v190_v43  ;;  %245 = vmatpush.msrb.mxu0 %v235_v61  ;;  %v225_v7 = vld [vmem:[#allocation5 + $0x218] sm:$0xff]  ;;  %v294_v8 = vld [vmem:[#allocation7 + $0x2] ss:$0 sm:$0xff]  ;;  %v224_v12 = vld [vmem:[#allocation5 + $0x210] sm:$0xff] }
  0x25   :  { %124 = vmatpush.msra.mxu1 %v98_v13  ;;  %165 = vmatpush.msra.mxu2 %v143_v27  ;;  %v223_v13 = vld [vmem:[#allocation5 + $0x208] sm:$0xff]  ;;  %v296_v19 = vld [vmem:[#allocation7 + $0x4] ss:$0 sm:$0xff] }
  0x26   :  { %205 = vmatpush.msra.mxu3 %v189_v44  ;;  %246 = vmatpush.msrb.mxu0 %v234_v62 }
  0x27   :  { %125 = vmatpush.msra.mxu1 %v97_v14  ;;  %166 = vmatpush.msra.mxu2 %v142_v28  ;;  %v222_v14 = vld [vmem:[#allocation5 + $0x200] sm:$0xff] }
  0x28   :  { %206 = vmatpush.msra.mxu3 %v188_v45  ;;  %247 = vmatpush.msrb.mxu0 %v233_v63 }
  0x29   :  { %126 = vmatpush.msra.mxu1 %v96_v15  ;;  %167 = vmatpush.msra.mxu2 %v141_v29  ;;  %v295_v15 = vld [vmem:[#allocation7 + $0x3] ss:$0 sm:$0xff] }
  0x2a   :  { %207 = vmatpush.msra.mxu3 %v187_v46  ;;  %248 = vmatpush.msrb.mxu0 %v232_v0 }
  0x2b   :  { %127 = vmatpush.msra.mxu1 %v95_v16  ;;  %168 = vmatpush.msra.mxu2 %v140_v30 }
  0x2c   :  { %208 = vmatpush.msra.mxu3 %v186_v47  ;;  %249 = vmatpush.msrb.mxu0 %v231_v1 }
  0x2d   :  { %128 = vmatpush.msra.mxu1 %v94_v17  ;;  %169 = vmatpush.msra.mxu2 %v139_v31 }
  0x2e   :  { %209 = vmatpush.msra.mxu3 %v185_v48  ;;  %250 = vmatpush.msrb.mxu0 %v230_v2 }
  0x2f   :  { %129 = vmatpush.msra.mxu1 %v93_v18  ;;  %170 = vmatpush.msra.mxu2 %v138_v36 }
  0x30   :  { %210 = vmatpush.msra.mxu3 %v184_v49  ;;  %251 = vmatpush.msrb.mxu0 %v229_v3 }
  0x31   :  { %171 = vmatpush.msra.mxu2 %v137_v37 }
  0x32   :  { %211 = vmatpush.msra.mxu3 %v183_v50  ;;  %252 = vmatpush.msrb.mxu0 %v228_v4 }
  0x33   :  { %172 = vmatpush.msra.mxu2 %v136_v38 }
  0x34   :  { %212 = vmatpush.msra.mxu3 %v182_v51  ;;  %253 = vmatpush.msrb.mxu0 %v227_v5 }
  0x36   :  { %213 = vmatpush.msra.mxu3 %v181_v56  ;;  %254 = vmatpush.msrb.mxu0 %v226_v6 }
  0x38   :  { %214 = vmatpush.msra.mxu3 %v180_v57  ;;  %255 = vmatpush.msrb.mxu0 %v225_v7 }
  0x3a   :  { %215 = vmatpush.msra.mxu3 %v179_v58  ;;  %256 = vmatpush.msrb.mxu0 %v224_v12 }
  0x3c   :  { %257 = vmatpush.msrb.mxu0 %v223_v13 }
  0x3e   :  { %258 = vmatpush.msrb.mxu0 %v222_v14 }
  0x8f   :  { %v88_v33 = vpop.f32.mrf.mxu0 }
  0x90   :  { %v89_v34 = vadd.f32 %v292_v32, %v88_v33 }
  0x92   :  { %v91_v35 = vmax.f32 %v89_v34, 0.0 }
  0x94   :  { %130 = vmatmul.f32.vlgmr.msra.gmra.mxu1 %v91_v35 }
 0x111   :  { %v131_v53 = vpop.f32.mrf.mxu1 }
 0x112   :  { %v132_v54 = vadd.f32 %v293_v52, %v131_v53 }
 0x114   :  { %v134_v55 = vmax.f32 %v132_v54, 0.0 }
 0x116   :  { %173 = vmatmul.f32.vlgmr.msra.gmra.mxu2 %v134_v55 }
 0x199   :  { %v174_v9 = vpop.f32.mrf.mxu2 }
 0x19a   :  { %v175_v10 = vadd.f32 %v294_v8, %v174_v9 }
 0x19c   :  { %v177_v11 = vmax.f32 %v175_v10, 0.0 }
 0x19e   :  { %216 = vmatmul.f32.vlgmr.msra.gmra.mxu3 %v177_v11 }
 0x221   :  { %v217_v16 = vpop.f32.mrf.mxu3 }
 0x222   :  { %v218_v17 = vadd.f32 %v295_v15, %v217_v16 }
 0x224   :  { %v220_v18 = vmax.f32 %v218_v17, 0.0 }
 0x226   :  { %259 = vmatmul.f32.vlgmr.msrb.gmra.mxu0 %v220_v18 }
 0x2a3   :  { %v260_v20 = vpop.f32.mrf.mxu0 }
 0x2a4   :  { %v261_v21 = vadd.f32 %v296_v19, %v260_v20 }
 0x2a6   :  { %264 = vst.msk [vmem:[#allocation8] sm:$0xff] %vm263_vm1, %v261_v21 }
 0x2a7   :  { %275 = dma.vmem_to_hbm [thread:$0]  %s271_s2, 128, %s273_s5, [#allocation4]  }
 0x2a8   :  { %397 = dma.done.wait [#allocation4], 128  }
 0x2a9   :  { %398 = vsyncadd [#allocation4], 4294967168 }
 0x2aa   :  { %280 = vsyncpa [#allocation3], 1 }
 0x2ab   :  { %281 = vsyncpa [#allocation6], 1 }
 0x2ac   :  { %282 = vsyncpa [#allocation4], 1 }

</bundles_post_ra>
